<compile_context>
chip_gen: v7x
topology: tpu7x:2x2x1
jax: 0.10.0
libtpu: 0.0.40
codegen_flags: <defaults>
</compile_context>

<pallas_src>
import functools

import jax
import jax.numpy as jnp
from jax.experimental import pallas as pl
from jax.experimental.pallas import tpu as pltpu


def _round_up(x, m):
    return ((x + m - 1) // m) * m


def _softplus(x):
    # Numerically stable softplus, matches torch.nn.Softplus (beta=1, threshold=20).
    return jnp.where(x > 20.0, x, jnp.log1p(jnp.exp(jnp.minimum(x, 20.0))))


def policy_kernel(
    s_ref,        # [tm, state_dim]
    w1_ref,       # [state_dim, 128]
    b1_ref,       # [1, 128]
    w2_ref,       # [128, 128]   (cols 96:128 zero)
    b2_ref,       # [1, 128]     (cols 96:128 zero)
    wh_ref,       # [128, 128]   block-diagonal fused heads
    bh_ref,       # [1, 128]     packed head biases
    out_ref,      # [tm, 128]    packed alpha | beta | critic | zeros
    *,
    action_dim,
):
    s = s_ref[...]

    # Trunk: Linear(state_dim,128) -> ReLU -> Linear(128,128 padded) -> ReLU.
    h1 = jnp.dot(s, w1_ref[...], preferred_element_type=jnp.float32) + b1_ref[...]
    h1 = jnp.maximum(h1, 0.0)
    x = jnp.dot(h1, w2_ref[...], preferred_element_type=jnp.float32) + b2_ref[...]
    x = jnp.maximum(x, 0.0)          # padded lanes 96:128 stay exactly 0

    # Fused heads: one [tm,128] @ [128,128] matmul.
    #   cols 0:A       = alpha logits
    #   cols A:2A      = beta  logits
    #   col  2A        = critic
    #   cols 2A+1:128  = 0
    y = jnp.dot(x, wh_ref[...], preferred_element_type=jnp.float32) + bh_ref[...]

    # Softplus on the alpha/beta lanes only; critic (and zero padding) stays linear.
    lane = jax.lax.broadcasted_iota(jnp.int32, y.shape, 1)
    out_ref[...] = jnp.where(lane < 2 * action_dim, _softplus(y), y)


def pack_params(params):
    """Pad / fuse the raw per-layer weights ONCE (outside the per-call path)."""
    A = params["wa"].shape[1]

    w2p = jnp.zeros((128, 128), jnp.float32).at[:, :96].set(params["w2"])
    b2p = jnp.zeros((1, 128), jnp.float32).at[:, :96].set(params["b2"])

    # Block-diagonal fused head weight [128, 128]:
    #   rows 0:32  -> cols 0:A        (alpha)
    #   rows 32:64 -> cols A:2A       (beta)
    #   rows 64:96 -> col  2A         (critic)
    wh = jnp.zeros((128, 128), jnp.float32)
    wh = wh.at[0:32, 0:A].set(params["wa"])
    wh = wh.at[32:64, A:2 * A].set(params["wb"])
    wh = wh.at[64:96, 2 * A:2 * A + 1].set(params["wc"])

    bh = jnp.zeros((1, 128), jnp.float32)
    bh = bh.at[:, 0:A].set(params["ba"])
    bh = bh.at[:, A:2 * A].set(params["bb"])
    bh = bh.at[:, 2 * A:2 * A + 1].set(params["bc"])

    return dict(w1=params["w1"], b1=params["b1"], w2=w2p, b2=b2p, wh=wh, bh=bh)


@functools.partial(jax.jit, static_argnames=("action_dim",))
def policy_model_forward(states, packed, *, action_dim):
    """states: [B, state_dim] float32. packed: output of pack_params()."""
    B, state_dim = states.shape

    # Large batch tiles amortize the ~0.35us/step overhead; small batches get
    # a single (8-row-aligned) tile.  Sized to fit v7x's 64 MiB VMEM easily.
    tm = min(1024, _round_up(B, 8))
    Bp = _round_up(B, tm)
    if Bp != B:
        states = jnp.pad(states, ((0, Bp - B), (0, 0)))

    kernel = functools.partial(policy_kernel, action_dim=action_dim)

    out = pl.pallas_call(
        kernel,
        out_shape=jax.ShapeDtypeStruct((Bp, 128), jnp.float32),
        grid_spec=pltpu.PrefetchScalarGridSpec(
            num_scalar_prefetch=0,
            grid=(Bp // tm,),
            in_specs=[
                pl.BlockSpec((tm, state_dim), lambda i: (i, 0)),   # states: tiled
                pl.BlockSpec((state_dim, 128), lambda i: (0, 0)),  # w1: resident
                pl.BlockSpec((1, 128), lambda i: (0, 0)),          # b1
                pl.BlockSpec((128, 128), lambda i: (0, 0)),        # w2 (padded)
                pl.BlockSpec((1, 128), lambda i: (0, 0)),          # b2 (padded)
                pl.BlockSpec((128, 128), lambda i: (0, 0)),        # fused heads
                pl.BlockSpec((1, 128), lambda i: (0, 0)),          # packed head bias
            ],
            out_specs=pl.BlockSpec((tm, 128), lambda i: (i, 0)),
        ),
        compiler_params=pltpu.CompilerParams(
            dimension_semantics=("parallel",),   # shard batch tiles across TCs (v7x)
            vmem_limit_bytes=32 << 20,           # safe for v7x's 64 MiB physical VMEM
        ),
    )(
        states,
        packed["w1"], packed["b1"],
        packed["w2"], packed["b2"],
        packed["wh"], packed["bh"],
    )

    out = out[:B]
    alpha = out[:, 0:action_dim]
    beta = out[:, action_dim:2 * action_dim]
    critic = out[:, 2 * action_dim:2 * action_dim + 1]
    return (alpha, beta), critic


def init_params(key, state_dim, action_dim):
    """Deterministic synthetic init. Weights stored as [in, out] (pre-transposed)."""
    ks = jax.random.split(key, 10)

    def lin(kw, kb, fan_in, fan_out):
        bound = 1.0 / jnp.sqrt(fan_in)
        w = jax.random.uniform(kw, (fan_in, fan_out), jnp.float32, -bound, bound)
        b = jax.random.uniform(kb, (1, fan_out), jnp.float32, -bound, bound)
        return w, b

    w1, b1 = lin(ks[0], ks[1], state_dim, 128)
    w2, b2 = lin(ks[2], ks[3], 128, 96)
    wa, ba = lin(ks[4], ks[5], 32, action_dim)
    wb, bb = lin(ks[6], ks[7], 32, action_dim)
    wc, bc = lin(ks[8], ks[9], 32, 1)
    return dict(w1=w1, b1=b1, w2=w2, b2=b2, wa=wa, ba=ba, wb=wb, bb=bb, wc=wc, bc=bc)


def _ref_forward(states, p):
    """Pure-JAX reference for sanity checking (mirrors the PyTorch module)."""
    h = jnp.maximum(states @ p["w1"] + p["b1"], 0.0)
    x = jnp.maximum(h @ p["w2"] + p["b2"], 0.0)
    sp = lambda z: jnp.where(z > 20.0, z, jnp.log1p(jnp.exp(jnp.minimum(z, 20.0))))
    alpha = sp(x[:, :32] @ p["wa"] + p["ba"])
    beta = sp(x[:, 32:64] @ p["wb"] + p["bb"])
    critic = x[:, 64:96] @ p["wc"] + p["bc"]
    return (alpha, beta), critic


if __name__ == "__main__":
    key = jax.random.PRNGKey(0)
    k_param, k_state = jax.random.split(key)

    batch = 8
    state_dim = 24
    action_dim = 4

    params = init_params(k_param, state_dim, action_dim)
    packed = pack_params(params)
    states = jax.random.normal(k_state, (batch, state_dim), jnp.float32)

    (alpha, beta), critic = policy_model_forward(states, packed, action_dim=action_dim)
    jax.block_until_ready((alpha, beta, critic))

    # Cross-check against pure-JAX reference of the original (unfused) network.
    (alpha_r, beta_r), critic_r = _ref_forward(states, params)
    assert alpha.shape == (batch, action_dim)
    assert beta.shape == (batch, action_dim)
    assert critic.shape == (batch, 1)
    assert jnp.allclose(alpha, alpha_r, atol=1e-5, rtol=1e-5)
    assert jnp.allclose(beta, beta_r, atol=1e-5, rtol=1e-5)
    assert jnp.allclose(critic, critic_r, atol=1e-5, rtol=1e-5)

    print("KERNEL_OK")
</pallas_src>

<mosaic_0001>
module attributes {stable_mosaic.version = 11 : i64} {
  func.func @policy_kernel(%arg0: i32, %arg1: memref<8x24xf32, #tpu.memory_space<vmem>>, %arg2: memref<24x128xf32, #tpu.memory_space<vmem>>, %arg3: memref<1x128xf32, #tpu.memory_space<vmem>>, %arg4: memref<128x128xf32, #tpu.memory_space<vmem>>, %arg5: memref<1x128xf32, #tpu.memory_space<vmem>>, %arg6: memref<128x128xf32, #tpu.memory_space<vmem>>, %arg7: memref<1x128xf32, #tpu.memory_space<vmem>>, %arg8: memref<8x128xf32, #tpu.memory_space<vmem>>) attributes {dimension_semantics = [#tpu.dimension_semantics<parallel>], iteration_bounds = array<i64: 1>, scalar_prefetch = 0 : i64, scratch_operands = 0 : i64, tpu.core_type = #tpu.core_type<tc>, window_params = [{transform_indices = @transform_0, window_bounds = array<i64: 8, 24>}, {pipeline_mode = #tpu.pipeline_mode<synchronous>, transform_indices = @transform_1, window_bounds = array<i64: 24, 128>}, {pipeline_mode = #tpu.pipeline_mode<synchronous>, transform_indices = @transform_2, window_bounds = array<i64: 1, 128>}, {pipeline_mode = #tpu.pipeline_mode<synchronous>, transform_indices = @transform_3, window_bounds = array<i64: 128, 128>}, {pipeline_mode = #tpu.pipeline_mode<synchronous>, transform_indices = @transform_4, window_bounds = array<i64: 1, 128>}, {pipeline_mode = #tpu.pipeline_mode<synchronous>, transform_indices = @transform_5, window_bounds = array<i64: 128, 128>}, {pipeline_mode = #tpu.pipeline_mode<synchronous>, transform_indices = @transform_6, window_bounds = array<i64: 1, 128>}, {transform_indices = @transform_7, window_bounds = array<i64: 8, 128>}]} {
    %c0 = arith.constant 0 : index
    %c0_0 = arith.constant 0 : index
    %0 = vector.load %arg1[%c0, %c0_0] : memref<8x24xf32, #tpu.memory_space<vmem>>, vector<8x24xf32>
    %c0_1 = arith.constant 0 : index
    %c0_2 = arith.constant 0 : index
    %1 = vector.load %arg2[%c0_1, %c0_2] : memref<24x128xf32, #tpu.memory_space<vmem>>, vector<24x128xf32>
    %cst = arith.constant dense<0.000000e+00> : vector<8x128xf32>
    %2 = tpu.matmul %0, %1, %cst {dimension_numbers = #tpu.dot_dimension_numbers<[1], [0], [0], [1], [0, 0, 1, 1], [], []>} : vector<8x24xf32>, vector<24x128xf32>, vector<8x128xf32> -> vector<8x128xf32>
    %c0_3 = arith.constant 0 : index
    %c0_4 = arith.constant 0 : index
    %3 = vector.load %arg3[%c0_3, %c0_4] : memref<1x128xf32, #tpu.memory_space<vmem>>, vector<1x128xf32>
    %4 = vector.broadcast %3 : vector<1x128xf32> to vector<8x128xf32>
    %5 = arith.addf %2, %4 : vector<8x128xf32>
    %cst_5 = arith.constant 0.000000e+00 : f32
    %6 = vector.broadcast %cst_5 : f32 to vector<8x128xf32>
    %7 = arith.maximumf %5, %6 : vector<8x128xf32>
    %c0_6 = arith.constant 0 : index
    %c0_7 = arith.constant 0 : index
    %8 = vector.load %arg4[%c0_6, %c0_7] : memref<128x128xf32, #tpu.memory_space<vmem>>, vector<128x128xf32>
    %cst_8 = arith.constant dense<0.000000e+00> : vector<8x128xf32>
    %9 = tpu.matmul %7, %8, %cst_8 {dimension_numbers = #tpu.dot_dimension_numbers<[1], [0], [0], [1], [0, 0, 1, 1], [], []>} : vector<8x128xf32>, vector<128x128xf32>, vector<8x128xf32> -> vector<8x128xf32>
    %c0_9 = arith.constant 0 : index
    %c0_10 = arith.constant 0 : index
    %10 = vector.load %arg5[%c0_9, %c0_10] : memref<1x128xf32, #tpu.memory_space<vmem>>, vector<1x128xf32>
    %11 = vector.broadcast %10 : vector<1x128xf32> to vector<8x128xf32>
    %12 = arith.addf %9, %11 : vector<8x128xf32>
    %cst_11 = arith.constant 0.000000e+00 : f32
    %13 = vector.broadcast %cst_11 : f32 to vector<8x128xf32>
    %14 = arith.maximumf %12, %13 : vector<8x128xf32>
    %c0_12 = arith.constant 0 : index
    %c0_13 = arith.constant 0 : index
    %15 = vector.load %arg6[%c0_12, %c0_13] : memref<128x128xf32, #tpu.memory_space<vmem>>, vector<128x128xf32>
    %cst_14 = arith.constant dense<0.000000e+00> : vector<8x128xf32>
    %16 = tpu.matmul %14, %15, %cst_14 {dimension_numbers = #tpu.dot_dimension_numbers<[1], [0], [0], [1], [0, 0, 1, 1], [], []>} : vector<8x128xf32>, vector<128x128xf32>, vector<8x128xf32> -> vector<8x128xf32>
    %c0_15 = arith.constant 0 : index
    %c0_16 = arith.constant 0 : index
    %17 = vector.load %arg7[%c0_15, %c0_16] : memref<1x128xf32, #tpu.memory_space<vmem>>, vector<1x128xf32>
    %18 = vector.broadcast %17 : vector<1x128xf32> to vector<8x128xf32>
    %19 = arith.addf %16, %18 : vector<8x128xf32>
    %20 = tpu.iota {dimensions = array<i32: 1>} : vector<8x128xi32>
    %c8_i32 = arith.constant 8 : i32
    %21 = vector.broadcast %c8_i32 : i32 to vector<8x128xi32>
    %22 = arith.cmpi slt, %20, %21 : vector<8x128xi32>
    %cst_17 = arith.constant 2.000000e+01 : f32
    %23 = vector.broadcast %cst_17 : f32 to vector<8x128xf32>
    %24 = arith.cmpf ogt, %19, %23 : vector<8x128xf32>
    %cst_18 = arith.constant 2.000000e+01 : f32
    %25 = vector.broadcast %cst_18 : f32 to vector<8x128xf32>
    %26 = arith.minimumf %19, %25 : vector<8x128xf32>
    %27 = math.exp %26 : vector<8x128xf32>
    %28 = math.log1p %27 : vector<8x128xf32>
    %29 = arith.select %24, %19, %28 : vector<8x128xi1>, vector<8x128xf32>
    %30 = arith.select %22, %29, %19 : vector<8x128xi1>, vector<8x128xf32>
    %c0_19 = arith.constant 0 : index
    %c0_20 = arith.constant 0 : index
    %31 = vector.load %arg8[%c0_19, %c0_20] : memref<8x128xf32, #tpu.memory_space<vmem>>, vector<8x128xf32>
    tpu.vector_store %arg8[%c0_19, %c0_20], %30 {strides = array<i32>} : memref<8x128xf32, #tpu.memory_space<vmem>>, vector<8x128xf32>,
    return
  }
  func.func @transform_0(%arg0: i32) -> (i32, i32) {
    %c0_i32 = arith.constant 0 : i32
    %c0_i32_0 = arith.constant 0 : i32
    return %arg0, %c0_i32 : i32, i32
  }
  func.func @transform_1(%arg0: i32) -> (i32, i32) {
    %c0_i32 = arith.constant 0 : i32
    %c0_i32_0 = arith.constant 0 : i32
    %c0_i32_1 = arith.constant 0 : i32
    return %c0_i32, %c0_i32_0 : i32, i32
  }
  func.func @transform_2(%arg0: i32) -> (i32, i32) {
    %c0_i32 = arith.constant 0 : i32
    %c0_i32_0 = arith.constant 0 : i32
    %c0_i32_1 = arith.constant 0 : i32
    return %c0_i32, %c0_i32_0 : i32, i32
  }
  func.func @transform_3(%arg0: i32) -> (i32, i32) {
    %c0_i32 = arith.constant 0 : i32
    %c0_i32_0 = arith.constant 0 : i32
    %c0_i32_1 = arith.constant 0 : i32
    return %c0_i32, %c0_i32_0 : i32, i32
  }
  func.func @transform_4(%arg0: i32) -> (i32, i32) {
    %c0_i32 = arith.constant 0 : i32
    %c0_i32_0 = arith.constant 0 : i32
    %c0_i32_1 = arith.constant 0 : i32
    return %c0_i32, %c0_i32_0 : i32, i32
  }
  func.func @transform_5(%arg0: i32) -> (i32, i32) {
    %c0_i32 = arith.constant 0 : i32
    %c0_i32_0 = arith.constant 0 : i32
    %c0_i32_1 = arith.constant 0 : i32
    return %c0_i32, %c0_i32_0 : i32, i32
  }
  func.func @transform_6(%arg0: i32) -> (i32, i32) {
    %c0_i32 = arith.constant 0 : i32
    %c0_i32_0 = arith.constant 0 : i32
    %c0_i32_1 = arith.constant 0 : i32
    return %c0_i32, %c0_i32_0 : i32, i32
  }
  func.func @transform_7(%arg0: i32) -> (i32, i32) {
    %c0_i32 = arith.constant 0 : i32
    %c0_i32_0 = arith.constant 0 : i32
    return %arg0, %c0_i32 : i32, i32
  }
}

</mosaic_0001>

<bundles_post_ra>
// kernel: policy_model_forward.1
= control target key start
LH: loop header
LB: loop body
LE: loop exit
PB: predicated region body
PF: predicated region fallthrough
CT: control target
= control target key end

     0   :  { %12 = vsyncpa [#allocation3], 0  ;;  %s795_s0 = inlined_call_operand.hbm [shape: f32[8,24], index: 0, kind: input, shape index: {}]   ;;  %s796_s1 = inlined_call_operand.hbm [shape: f32[24,128], index: 1, kind: input, shape index: {}]   ;;  %s797_s2 = inlined_call_operand.vmem [shape: f32[1,128], index: 2, kind: input, shape index: {}]   ;;  %s798_s3 = inlined_call_operand.hbm [shape: f32[128,128], index: 3, kind: input, shape index: {}]   ;;  %s799_s4 = inlined_call_operand.vmem [shape: f32[1,128], index: 4, kind: input, shape index: {}]   ;;  %s800_s5 = inlined_call_operand.hbm [shape: f32[128,128], index: 5, kind: input, shape index: {}]   ;;  %s801_s6 = inlined_call_operand.vmem [shape: f32[1,128], index: 6, kind: input, shape index: {}]   ;;  %s802_s7 = inlined_call_operand.vmem [shape: f32[8,128], index: 7, kind: output, shape index: {}]  }
   0x1   :  { %13 = vsyncpa [#allocation5], 0 }
   0x2   :  { %14 = vsyncpa [#allocation8], 0  ;;  %s657_s24 = smov [#allocation4]   ;;  %s563_s28 = scalar_lea.hbm %s796_s1, 384 }
   0x3   :  { %s30_s25 = sshll.u32 %s657_s24, 4  ;;  %p564_p0 = scmp.ne.s32.totalorder %s796_s1, %s563_s28  ;;  %s31_s25 = int_to_ptr.vmem [resolvable:$true] %s30_s25 }
   0x4   :  { %p567_p1 = scmp.lt.u32.totalorder %s563_s28, %s796_s1 }
   0x6   :  { %p569_p2 = pnand %p567_p1, %p564_p0 }
   0x8   :  { %572 = shalt.err (!%p569_p2)
}
   0x9   :  { %s573_s10 = scalar_lea.vmem %s31_s25, 384  ;;  %p578_p4 = scmp.lt.s32.totalorder %s31_s25, %s31_s25 }
   0xa   :  { %p574_p3 = scmp.ne.s32.totalorder %s31_s25, %s573_s10  ;;  %p579_p5 = scmp.lt.s32.totalorder %s573_s10, %s573_s10 }
   0xc   :  { %p580_p6 = por %p579_p5, %p578_p4 }
   0xe   :  { %p581_p7 = pnand %p580_p6, %p574_p3 }
  0x10   :  { %584 = shalt.err (!%p581_p7)
}
  0x11   :  { %s658_s11 = smov 128   ;;  %s659_s12 = smov 8  }
  0x12   :  { %36 = dma.hbm_to_vmem [thread:$0]  %s796_s1, 384, %s31_s25, [#allocation5], %s658_s11, %s658_s11, %s659_s12  }
  0x13   :  { %s660_s15 = smov [#allocation2]   ;;  %s661_s17 = smov [#allocation6]  }
  0x14   :  { %s21_s16 = sshll.u32 %s660_s15, 4  ;;  %s44_s18 = sshll.u32 %s661_s17, 4  ;;  %s22_s16 = int_to_ptr.vmem [resolvable:$true] %s21_s16  ;;  %s45_s18 = int_to_ptr.vmem [resolvable:$true] %s44_s18 }
  0x15   :  { %s585_s21 = scalar_lea.hbm %s795_s0, 128 }
  0x16   :  { %p586_p8 = scmp.ne.s32.totalorder %s795_s0, %s585_s21  ;;  %p589_p9 = scmp.lt.u32.totalorder %s585_s21, %s795_s0 }
  0x18   :  { %p591_p10 = pnand %p589_p9, %p586_p8 }
  0x1a   :  { %594 = shalt.err (!%p591_p10)
}
  0x1b   :  { %s595_s1 = scalar_lea.vmem %s22_s16, 128  ;;  %p600_p12 = scmp.lt.s32.totalorder %s22_s16, %s22_s16 }
  0x1c   :  { %p596_p11 = scmp.ne.s32.totalorder %s22_s16, %s595_s1  ;;  %p601_p13 = scmp.lt.s32.totalorder %s595_s1, %s595_s1 }
  0x1e   :  { %p602_p0 = por %p601_p13, %p600_p12 }
  0x20   :  { %p603_p1 = pnand %p602_p0, %p596_p11 }
  0x22   :  { %606 = shalt.err (!%p603_p1)
}
  0x23   :  { %24 = dma.hbm_to_vmem [thread:$0]  %s795_s0, 128, %s22_s16, [#allocation3]  }
  0x24   :  { %s607_s30 = scalar_lea.hbm %s798_s3, 2048 }
  0x25   :  { %p608_p2 = scmp.ne.s32.totalorder %s798_s3, %s607_s30  ;;  %p611_p3 = scmp.lt.u32.totalorder %s607_s30, %s798_s3 }
  0x27   :  { %p613_p4 = pnand %p611_p3, %p608_p2 }
  0x29   :  { %616 = shalt.err (!%p613_p4)
}
  0x2a   :  { %s617_s14 = scalar_lea.vmem %s45_s18, 2048  ;;  %p622_p6 = scmp.lt.s32.totalorder %s45_s18, %s45_s18 }
  0x2b   :  { %p618_p5 = scmp.ne.s32.totalorder %s45_s18, %s617_s14  ;;  %p623_p7 = scmp.lt.s32.totalorder %s617_s14, %s617_s14 }
  0x2d   :  { %p624_p8 = por %p623_p7, %p622_p6 }
  0x2f   :  { %p625_p9 = pnand %p624_p8, %p618_p5 }
  0x31   :  { %628 = shalt.err (!%p625_p9)
}
  0x32   :  { %50 = dma.hbm_to_vmem [thread:$0]  %s798_s3, 2048, %s45_s18, [#allocation5], %s658_s11, %s658_s11, %s659_s12  }
  0x33   :  { %s662_s16 = smov [#allocation7]   ;;  %s629_s21 = scalar_lea.hbm %s800_s5, 2048 }
  0x34   :  { %s58_s17 = sshll.u32 %s662_s16, 4  ;;  %p630_p10 = scmp.ne.s32.totalorder %s800_s5, %s629_s21  ;;  %s59_s17 = int_to_ptr.vmem [resolvable:$true] %s58_s17 }
  0x35   :  { %p633_p11 = scmp.lt.u32.totalorder %s629_s21, %s800_s5 }
  0x37   :  { %p635_p12 = pnand %p633_p11, %p630_p10 }
  0x39   :  { %638 = shalt.err (!%p635_p12)
}
  0x3a   :  { %s639_s1 = scalar_lea.vmem %s59_s17, 2048  ;;  %p644_p0 = scmp.lt.s32.totalorder %s59_s17, %s59_s17 }
  0x3b   :  { %p640_p13 = scmp.ne.s32.totalorder %s59_s17, %s639_s1  ;;  %p645_p1 = scmp.lt.s32.totalorder %s639_s1, %s639_s1 }
  0x3d   :  { %p646_p2 = por %p645_p1, %p644_p0 }
  0x3f   :  { %p647_p3 = pnand %p646_p2, %p640_p13 }
  0x41   :  { %650 = shalt.err (!%p647_p3)
}
  0x42   :  { %64 = dma.hbm_to_vmem [thread:$0]  %s800_s5, 2048, %s59_s17, [#allocation8], %s658_s11, %s658_s11, %s659_s12  }
  0x43   :  { %651 = dma.done.wait [#allocation3], 128  }
  0x44   :  { %652 = vsyncadd [#allocation3], 4294967168 }
  0x45   :  { %653 = dma.done.wait [#allocation5], 2432  }
  0x46   :  { %654 = vsyncadd [#allocation5], 4294964864 }
  0x47   :  { %655 = dma.done.wait [#allocation8], 2048  }
  0x48   :  { %656 = vsyncadd [#allocation8], 4294965248  ;;  %v663_v0 = vmov 0.0|0.0   ;;  %vm664_vm0 = vmmov 0   ;;  %v665_v1 = vmov 0.0   ;;  %v80_v2 = vld [vmem:[#allocation4] sm:$0xff] }
  0x49   :  { %499 = vmatprep.subr.bf16.mxu0 %v663_v0  ;;  %426 = vmatprep.mubr.msk.f32.mxu0 %vm664_vm0, %v665_v1  ;;  %v81_v3 = vld [vmem:[#allocation4 + $0x8] sm:$0xff]  ;;  %v165_v5 = vld [vmem:[#allocation6] sm:$0xff]  ;;  %v166_v6 = vld [vmem:[#allocation6 + $0x8] sm:$0xff]  ;;  %vm90_vm1 = vcmask 195584  }
  0x4a   :  { %502 = vmatprep.subr.bf16.mxu1 %v663_v0  ;;  %461 = vmatprep.mubr.msk.f32.mxu1 %vm664_vm0, %v665_v1  ;;  %v500_v4 = vpack.c.bf16 %v81_v3, %v80_v2  ;;  %v503_v7 = vpack.c.bf16 %v166_v6, %v165_v5  ;;  %v167_v8 = vld [vmem:[#allocation6 + $0x10] sm:$0xff]  ;;  %v168_v9 = vld [vmem:[#allocation6 + $0x18] sm:$0xff]  ;;  %v79_v12 = vld [vmem:[#allocation2] sm:$0xff] }
  0x4b   :  { %v82_v10 = vld [vmem:[#allocation4 + $0x10] sm:$0xff]  ;;  %v506_v11 = vpack.c.bf16 %v168_v9, %v167_v8  ;;  %v169_v13 = vld [vmem:[#allocation6 + $0x20] sm:$0xff]  ;;  %v170_v14 = vld [vmem:[#allocation6 + $0x28] sm:$0xff] }
  0x4c   :  { %501 = vmatpush3.bf16.msra.mxu0 %v500_v4  ;;  %504 = vmatpush3.bf16.msra.mxu1 %v503_v7  ;;  %v509_v15 = vpack.c.bf16 %v170_v14, %v169_v13  ;;  %v171_v16 = vld [vmem:[#allocation6 + $0x30] sm:$0xff]  ;;  %v172_v17 = vld [vmem:[#allocation6 + $0x38] sm:$0xff]  ;;  %v173_v19 = vld [vmem:[#allocation6 + $0x40] sm:$0xff] }
  0x4d   :  { %424 = vmatprep.subr.mxu0 %v665_v1  ;;  %505 = vmatprep.subr.bf16.mxu1 %v663_v0  ;;  %v512_v18 = vpack.c.bf16 %v172_v17, %v171_v16  ;;  %v174_v20 = vld [vmem:[#allocation6 + $0x48] sm:$0xff]  ;;  %v175_v22 = vld [vmem:[#allocation6 + $0x50] sm:$0xff]  ;;  %v176_v23 = vld [vmem:[#allocation6 + $0x58] sm:$0xff] }
  0x4e   :  { %v515_v21 = vpack.c.bf16 %v174_v20, %v173_v19  ;;  %v518_v24 = vpack.c.bf16 %v176_v23, %v175_v22  ;;  %v177_v25 = vld [vmem:[#allocation6 + $0x60] sm:$0xff]  ;;  %v178_v26 = vld [vmem:[#allocation6 + $0x68] sm:$0xff]  ;;  %v179_v28 = vld [vmem:[#allocation6 + $0x70] sm:$0xff] }
  0x4f   :  { %v521_v27 = vpack.c.bf16 %v178_v26, %v177_v25  ;;  %v180_v29 = vld [vmem:[#allocation6 + $0x78] sm:$0xff]  ;;  %v259_v31 = vld [vmem:[#allocation7] sm:$0xff]  ;;  %v260_v32 = vld [vmem:[#allocation7 + $0x8] sm:$0xff] }
  0x50   :  { %425 = vmatpush3.msra.mxu0 %v82_v10  ;;  %507 = vmatpush3.bf16.msra.mxu1 %v506_v11  ;;  %v524_v30 = vpack.c.bf16 %v180_v29, %v179_v28  ;;  %v261_v33 = vld [vmem:[#allocation7 + $0x10] sm:$0xff]  ;;  %v527_v34 = vpack.c.bf16 %v260_v32, %v259_v31  ;;  %v262_v35 = vld [vmem:[#allocation7 + $0x18] sm:$0xff]  ;;  %v263_v37 = vld [vmem:[#allocation7 + $0x20] sm:$0xff]  ;;  %v352_v10 = vlaneseq }
  0x51   :  { %427 = vmatmul.mubr.msk.f32.vlgmr.msra.gmra.mrb[0].mxu0 %vm90_vm1, %v79_v12  ;;  %508 = vmatprep.subr.bf16.mxu1 %v663_v0  ;;  %v530_v36 = vpack.c.bf16 %v262_v35, %v261_v33  ;;  %v264_v38 = vld [vmem:[#allocation7 + $0x28] sm:$0xff]  ;;  %v265_v40 = vld [vmem:[#allocation7 + $0x30] sm:$0xff]  ;;  %v266_v41 = vld [vmem:[#allocation7 + $0x38] sm:$0xff] }
  0x52   :  { %526 = vmatprep.subr.bf16.mxu0 %v663_v0  ;;  %496 = vmatprep.mubr.msk.f32.mxu0 %vm664_vm0, %v665_v1  ;;  %v533_v39 = vpack.c.bf16 %v264_v38, %v263_v37  ;;  %v536_v42 = vpack.c.bf16 %v266_v41, %v265_v40  ;;  %v267_v43 = vld [vmem:[#allocation7 + $0x40] sm:$0xff]  ;;  %v268_v44 = vld [vmem:[#allocation7 + $0x48] sm:$0xff]  ;;  %v269_v46 = vld [vmem:[#allocation7 + $0x50] sm:$0xff]  ;;  %v353_v12 = vand.u32 127, %v352_v10 }
  0x53   :  { %528 = vmatpush3.bf16.msra.mxu0 %v527_v34  ;;  %v539_v45 = vpack.c.bf16 %v268_v44, %v267_v43  ;;  %v270_v47 = vld [vmem:[#allocation7 + $0x58] sm:$0xff]  ;;  %v271_v49 = vld [vmem:[#allocation7 + $0x60] sm:$0xff]  ;;  %v272_v50 = vld [vmem:[#allocation7 + $0x68] sm:$0xff] }
  0x54   :  { %510 = vmatpush3.bf16.msra.mxu1 %v509_v15  ;;  %529 = vmatprep.subr.bf16.mxu0 %v663_v0  ;;  %v542_v48 = vpack.c.bf16 %v270_v47, %v269_v46  ;;  %v545_v51 = vpack.c.bf16 %v272_v50, %v271_v49  ;;  %v378_v52 = vld [vmem:[%s797_s2] ss:$0 sm:$0xff]  ;;  %v273_v57 = vld [vmem:[#allocation7 + $0x70] sm:$0xff]  ;;  %v274_v58 = vld [vmem:[#allocation7 + $0x78] sm:$0xff]  ;;  %vm354_vm2 = vcmp.lt.s32.totalorder %v353_v12, 8 }
  0x55   :  { %511 = vmatprep.subr.bf16.mxu1 %v663_v0  ;;  %v548_v59 = vpack.c.bf16 %v274_v58, %v273_v57  ;;  %v380_v60 = vld [vmem:[%s799_s4] ss:$0 sm:$0xff] }
  0x56   :  { %v381_v1 = vld [vmem:[%s801_s6] ss:$0 sm:$0xff] }
  0x57   :  { %531 = vmatpush3.bf16.msra.mxu0 %v530_v36 }
  0x58   :  { %513 = vmatpush3.bf16.msra.mxu1 %v512_v18  ;;  %532 = vmatprep.subr.bf16.mxu0 %v663_v0 }
  0x59   :  { %514 = vmatprep.subr.bf16.mxu1 %v663_v0 }
  0x5b   :  { %534 = vmatpush3.bf16.msra.mxu0 %v533_v39 }
  0x5c   :  { %516 = vmatpush3.bf16.msra.mxu1 %v515_v21  ;;  %535 = vmatprep.subr.bf16.mxu0 %v663_v0 }
  0x5d   :  { %517 = vmatprep.subr.bf16.mxu1 %v663_v0 }
  0x5f   :  { %537 = vmatpush3.bf16.msra.mxu0 %v536_v42 }
  0x60   :  { %519 = vmatpush3.bf16.msra.mxu1 %v518_v24  ;;  %538 = vmatprep.subr.bf16.mxu0 %v663_v0 }
  0x61   :  { %520 = vmatprep.subr.bf16.mxu1 %v663_v0 }
  0x63   :  { %540 = vmatpush3.bf16.msra.mxu0 %v539_v45 }
  0x64   :  { %522 = vmatpush3.bf16.msra.mxu1 %v521_v27  ;;  %541 = vmatprep.subr.bf16.mxu0 %v663_v0 }
  0x65   :  { %523 = vmatprep.subr.bf16.mxu1 %v663_v0 }
  0x67   :  { %543 = vmatpush3.bf16.msra.mxu0 %v542_v48 }
  0x68   :  { %525 = vmatpush3.bf16.msra.mxu1 %v524_v30  ;;  %544 = vmatprep.subr.bf16.mxu0 %v663_v0 }
  0x6b   :  { %546 = vmatpush3.bf16.msra.mxu0 %v545_v51 }
  0x6c   :  { %547 = vmatprep.subr.bf16.mxu0 %v663_v0 }
  0x6f   :  { %549 = vmatpush3.bf16.msra.mxu0 %v548_v59 }
 0x124   :  { %v160_v53 = vpop.f32.mrb[0].mxu0 }
 0x125   :  { %v161_v54 = vadd.f32 %v378_v52, %v160_v53  ;;  %v428_v55 = vpop.f32.mrb[1].mxu0 }
 0x127   :  { %v164_v56 = vmax.f32 %v161_v54, 0.0 }
 0x129   :  { %462 = vmatmul.mubr.f32.vlgmr.msra.gmra.mrb[0].mxu1 %v164_v56 }
 0x1fc   :  { %v254_v61 = vpop.f32.mrb[0].mxu1 }
 0x1fd   :  { %v255_v62 = vadd.f32 %v380_v60, %v254_v61  ;;  %v463_v63 = vpop.f32.mrb[1].mxu1 }
 0x1ff   :  { %v258_v0 = vmax.f32 %v255_v62, 0.0 }
 0x201   :  { %497 = vmatmul.mubr.f32.vlgmr.msra.gmra.mrb[2].mxu0 %v258_v0 }
 0x2d4   :  { %v348_v2 = vpop.f32.mrb[2].mxu0 }
 0x2d5   :  { %v349_v3 = vadd.f32 %v381_v1, %v348_v2  ;;  %v498_v4 = vpop.f32.mrb[3].mxu0 }
 0x2d7   :  { %v356_v5 = vmin.f32 %v349_v3, 20.0  ;;  %vm355_vm4 = vcmp.gt.f32.partialorder %v349_v3, 20.0 }
 0x2d9   :  { %v357_v6 = vmul.f32 1.442695, %v356_v5 }
 0x2db   :  { %559 = vpow2.f32 %v357_v6 }
 0x2e5   :  { %v560_v7 = vpop.eup %559 }
 0x2e6   :  { %v359_v8 = vadd.f32 1.0, %v560_v7  ;;  %v362_v9 = vmul.f32 -0.5, %v560_v7  ;;  %v365_v13 = vand.u32 2147483647, %v560_v7 }
 0x2e8   :  { %561 = vlog2.f32 %v359_v8  ;;  %v363_v11 = vadd.f32 1.0, %v362_v9  ;;  %vm366_vm3 = vcmp.lt.f32.partialorder %v365_v13, 0.0004427343 }
 0x2ea   :  { %v364_v16 = vmul.f32 %v560_v7, %v363_v11 }
 0x2f2   :  { %v562_v14 = vpop.eup %561 }
 0x2f3   :  { %v361_v15 = vmul.f32 0.6931472, %v562_v14 }
 0x2f5   :  { %v367_v17 = vsel %vm366_vm3, %v364_v16, %v361_v15 }
 0x2f6   :  { %v368_v18 = vsel %vm355_vm4, %v349_v3, %v367_v17 }
 0x2f7   :  { %v369_v19 = vsel %vm354_vm2, %v368_v18, %v349_v3 }
 0x2f8   :  { %370 = vst [vmem:[%s802_s7] sm:$0xff] %v369_v19 }
 0x2f9   :  { %375 = vsyncpa [#allocation3], 1 }
 0x2fa   :  { %376 = vsyncpa [#allocation5], 1 }
 0x2fb   :  { %377 = vsyncpa [#allocation8], 1 }

</bundles_post_ra>
